<compile_context>
chip_gen: v6e
topology: v6e:2x2x1
jax: 0.10.0
libtpu: 0.0.40
codegen_flags: <defaults>
</compile_context>

<pallas_src>
import functools

import jax
import jax.numpy as jnp
from jax import lax
from jax.experimental import pallas as pl
from jax.experimental.pallas import tpu as pltpu


# ----------------------------- Pallas kernel ------------------------------

def _scm_kernel(x_ref, mask_ref, w1_ref, w2_ref, w3_ref, w4_ref,
                w5x_ref, w5y_ref, b_ref, o_ref, *, H, W, imgs, boffs):
    HW = H * W
    mask = mask_ref[...]                                  # (9, HW) f32, {0,1}

    # weights (already bf16), loaded once per grid step
    w1 = w1_ref[...]                                      # (c1, 9*3)
    w2 = w2_ref[...]                                      # (c2, c1)
    w3 = w3_ref[...]                                      # (c2, 9*c2)
    w4 = w4_ref[...]                                      # (c3, c2)
    w5x = w5x_ref[...]                                    # (out, 3)
    w5y = w5y_ref[...]                                    # (out, c3)

    # biases, packed into one (104,1) array at 8-aligned offsets
    b1 = b_ref[boffs[0]:boffs[0] + w1_ref.shape[0], :]
    b2 = b_ref[boffs[1]:boffs[1] + w2_ref.shape[0], :]
    b3 = b_ref[boffs[2]:boffs[2] + w3_ref.shape[0], :]
    b4 = b_ref[boffs[3]:boffs[3] + w4_ref.shape[0], :]
    b5 = b_ref[boffs[4]:boffs[4] + w5x_ref.shape[0], :]

    def conv3x3_relu(inp, w_stacked, b):
        # inp: (cin, HW) f32.  Build the K = 9*cin stacked RHS from 9 shifted,
        # boundary-masked copies, then one MXU matmul (f32 accumulation).
        pieces = []
        t = 0
        for dy in (-1, 0, 1):
            for dx in (-1, 0, 1):
                off = dy * W + dx
                if off == 0:
                    xs = inp
                else:
                    # out[m] = inp[m + off] (wraps; mask kills wrapped lanes)
                    xs = pltpu.roll(inp, shift=(-off) % HW, axis=1)
                pieces.append(xs * mask[t])
                t += 1
        stack = jnp.concatenate(pieces, axis=0).astype(jnp.bfloat16)
        acc = jnp.dot(w_stacked, stack, preferred_element_type=jnp.float32)
        return jnp.maximum(acc + b, 0.0)

    for n in range(imgs):
        x = x_ref[n]                                                 # (3, HW)
        # main(x): BasicConv 3->c1 (k3) -> c1->c2 (k1) -> c2->c2 (k3) -> c2->c3 (k1)
        y1 = conv3x3_relu(x, w1, b1)                                 # (c1, HW)
        y2 = jnp.maximum(
            jnp.dot(w2, y1.astype(jnp.bfloat16),
                    preferred_element_type=jnp.float32) + b2, 0.0)   # (c2, HW)
        y3 = conv3x3_relu(y2, w3, b3)                                # (c2, HW)
        y4 = jnp.maximum(
            jnp.dot(w4, y3.astype(jnp.bfloat16),
                    preferred_element_type=jnp.float32) + b4, 0.0)   # (c3, HW)

        # conv(cat([x, main(x)])) == W_x @ x + W_y @ main(x) + b   (no ReLU)
        out = (jnp.dot(w5x, x.astype(jnp.bfloat16),
                       preferred_element_type=jnp.float32)
               + jnp.dot(w5y, y4.astype(jnp.bfloat16),
                         preferred_element_type=jnp.float32)
               + b5)
        o_ref[n] = out.astype(o_ref.dtype)


# ------------------------------- wrapper -----------------------------------

def _stack_w3x3(w_pt):
    """PyTorch (Cout, Cin, 3, 3) -> stacked-K matrix (Cout, 9*Cin)."""
    cout, cin, kh, kw = w_pt.shape
    return jnp.transpose(w_pt, (0, 2, 3, 1)).reshape(cout, kh * kw * cin)


def _pick_imgs_per_step(n):
    """Pack images per step, but keep the parallel grid >= 2 (v7x 2 TCs)."""
    best = 1
    for cand in range(1, min(n, 8) + 1):
        if n % cand == 0 and (n // cand >= 2 or n == 1):
            best = cand
    return best


@jax.jit
def scm_forward(x_nchw, params):
    """SCM forward: cat([x, main(x)], C) -> 1x1 conv (no ReLU). NCHW in/out."""
    N, Cin, H, W = x_nchw.shape                       # Cin == 3
    HW = H * W
    (w1, b1), (w2, b2), (w3, b3), (w4, b4), (w5, b5) = params
    c1, c2, c3 = w1.shape[0], w2.shape[0], w4.shape[0]
    out_plane = w5.shape[0]
    imgs = _pick_imgs_per_step(N)

    # input stays channels-first with flattened spatial — a free reshape
    x3 = x_nchw.reshape(N, Cin, HW)

    # bf16 matmul operands (accumulation stays f32 in-kernel)
    w1s = _stack_w3x3(w1).astype(jnp.bfloat16)                     # (c1, 27)
    w3s = _stack_w3x3(w3).astype(jnp.bfloat16)                     # (c2, 9*c2)
    w2m = w2.reshape(c2, c1).astype(jnp.bfloat16)
    w4m = w4.reshape(c3, c2).astype(jnp.bfloat16)
    w5m = w5.reshape(out_plane, out_plane)
    w5x = w5m[:, :Cin].astype(jnp.bfloat16)                        # x-part
    w5y = w5m[:, Cin:].astype(jnp.bfloat16)                        # main(x)-part

    # 9 boundary masks, computed once (one per 3x3 tap)
    lanes = jnp.arange(HW, dtype=jnp.int32)
    hh, ww = lanes // W, lanes % W
    rows = []
    for dy in (-1, 0, 1):
        for dx in (-1, 0, 1):
            rows.append((hh + dy >= 0) & (hh + dy < H) &
                        (ww + dx >= 0) & (ww + dx < W))
    mask = jnp.stack(rows, axis=0).astype(jnp.float32)             # (9, HW)

    # pack the 5 bias vectors into one array at 8-row-aligned offsets
    biases = [b1, b2, b3, b4, b5]
    boffs, off = [], 0
    for b in biases:
        boffs.append(off)
        off = (off + b.shape[0] + 7) // 8 * 8
    bpack = jnp.zeros((off, 1), jnp.float32)
    for o, b in zip(boffs, biases):
        bpack = bpack.at[o:o + b.shape[0], 0].set(b)
    boffs = tuple(boffs)

    kern = functools.partial(_scm_kernel, H=H, W=W, imgs=imgs, boffs=boffs)

    out3 = pl.pallas_call(
        kern,
        out_shape=jax.ShapeDtypeStruct((N, out_plane, HW), jnp.float32),
        grid=(N // imgs,),
        in_specs=[
            pl.BlockSpec((imgs, Cin, HW), lambda n: (n, 0, 0)),
            pl.BlockSpec(mask.shape, lambda n: (0, 0)),
            pl.BlockSpec(w1s.shape, lambda n: (0, 0)),
            pl.BlockSpec(w2m.shape, lambda n: (0, 0)),
            pl.BlockSpec(w3s.shape, lambda n: (0, 0)),
            pl.BlockSpec(w4m.shape, lambda n: (0, 0)),
            pl.BlockSpec(w5x.shape, lambda n: (0, 0)),
            pl.BlockSpec(w5y.shape, lambda n: (0, 0)),
            pl.BlockSpec(bpack.shape, lambda n: (0, 0)),
        ],
        out_specs=pl.BlockSpec((imgs, out_plane, HW), lambda n: (n, 0, 0)),
        compiler_params=pltpu.CompilerParams(
            dimension_semantics=("parallel",)),
    )(x3, mask, w1s, w2m, w3s, w4m, w5x, w5y, bpack)

    return out3.reshape(N, out_plane, H, W)


# ------------------------------ params init --------------------------------

def init_scm_params(key, out_plane):
    """Deterministic params; PyTorch Conv2d shapes (Cout, Cin, KH, KW)."""
    c1 = out_plane // 4
    c2 = out_plane // 2
    c3 = out_plane - 3
    shapes = [
        (c1, 3, 3, 3),                   # BasicConv(3, out//4, k=3) + ReLU
        (c2, c1, 1, 1),                  # BasicConv(out//4, out//2, k=1) + ReLU
        (c2, c2, 3, 3),                  # BasicConv(out//2, out//2, k=3) + ReLU
        (c3, c2, 1, 1),                  # BasicConv(out//2, out-3, k=1) + ReLU
        (out_plane, out_plane, 1, 1),    # self.conv: k=1, no ReLU
    ]
    params = []
    for s in shapes:
        key, kw_, kb_ = jax.random.split(key, 3)
        fan_in = s[1] * s[2] * s[3]
        bound = 1.0 / (fan_in ** 0.5)
        w = jax.random.uniform(kw_, s, jnp.float32, -bound, bound)
        bb = jax.random.uniform(kb_, (s[0],), jnp.float32, -bound, bound)
        params.append((w, bb))
    return params


# ----------------------- pure-JAX reference (check) ------------------------

def _conv_ref(x_nhwc, w_pt, b, relu):
    w_hwio = jnp.transpose(w_pt, (2, 3, 1, 0))
    y = lax.conv_general_dilated(
        x_nhwc, w_hwio, (1, 1), "SAME",
        dimension_numbers=("NHWC", "HWIO", "NHWC"))
    y = y + b
    return jnp.maximum(y, 0.0) if relu else y


def scm_ref(x_nchw, params):
    x = jnp.transpose(x_nchw, (0, 2, 3, 1))
    y = x
    for (w, b) in params[:4]:
        y = _conv_ref(y, w, b, True)
    z = jnp.concatenate([x, y], axis=-1)
    wf, bf = params[4]
    out = _conv_ref(z, wf, bf, False)
    return jnp.transpose(out, (0, 3, 1, 2))


# ---------------------------------- main -----------------------------------

if __name__ == "__main__":
    key = jax.random.PRNGKey(0)
    kx, kp = jax.random.split(key)

    out_plane = 32
    x = jax.random.normal(kx, (2, 3, 16, 16), jnp.float32)   # NCHW, like PyTorch
    params = init_scm_params(kp, out_plane)

    out = jax.block_until_ready(scm_forward(x, params))
    assert out.shape == (2, out_plane, 16, 16), out.shape

    ref = jax.block_until_ready(scm_ref(x, params))
    # bf16 matmul operands (f32 accumulation) => relaxed tolerance vs f32 ref.
    err = float(jnp.max(jnp.abs(out - ref)))
    assert jnp.allclose(out, ref, atol=5e-2, rtol=5e-2), err

    print("KERNEL_OK")
</pallas_src>

<mosaic_0001>
module attributes {stable_mosaic.version = 11 : i64} {
  func.func @_scm_kernel(%arg0: i32, %arg1: memref<1x3x256xf32, #tpu.memory_space<vmem>>, %arg2: memref<9x256xf32, #tpu.memory_space<vmem>>, %arg3: memref<8x27xbf16, #tpu.memory_space<vmem>>, %arg4: memref<16x8xbf16, #tpu.memory_space<vmem>>, %arg5: memref<16x144xbf16, #tpu.memory_space<vmem>>, %arg6: memref<29x16xbf16, #tpu.memory_space<vmem>>, %arg7: memref<32x3xbf16, #tpu.memory_space<vmem>>, %arg8: memref<32x29xbf16, #tpu.memory_space<vmem>>, %arg9: memref<104x1xf32, #tpu.memory_space<vmem>>, %arg10: memref<1x32x256xf32, #tpu.memory_space<vmem>>) attributes {dimension_semantics = [#tpu.dimension_semantics<parallel>], iteration_bounds = array<i64: 2>, scalar_prefetch = 0 : i64, scratch_operands = 0 : i64, tpu.core_type = #tpu.core_type<tc>, window_params = [{transform_indices = @transform_0, window_bounds = array<i64: 1, 3, 256>}, {pipeline_mode = #tpu.pipeline_mode<synchronous>, transform_indices = @transform_1, window_bounds = array<i64: 9, 256>}, {pipeline_mode = #tpu.pipeline_mode<synchronous>, transform_indices = @transform_2, window_bounds = array<i64: 8, 27>}, {pipeline_mode = #tpu.pipeline_mode<synchronous>, transform_indices = @transform_3, window_bounds = array<i64: 16, 8>}, {pipeline_mode = #tpu.pipeline_mode<synchronous>, transform_indices = @transform_4, window_bounds = array<i64: 16, 144>}, {pipeline_mode = #tpu.pipeline_mode<synchronous>, transform_indices = @transform_5, window_bounds = array<i64: 29, 16>}, {pipeline_mode = #tpu.pipeline_mode<synchronous>, transform_indices = @transform_6, window_bounds = array<i64: 32, 3>}, {pipeline_mode = #tpu.pipeline_mode<synchronous>, transform_indices = @transform_7, window_bounds = array<i64: 32, 29>}, {pipeline_mode = #tpu.pipeline_mode<synchronous>, transform_indices = @transform_8, window_bounds = array<i64: 104, 1>}, {transform_indices = @transform_9, window_bounds = array<i64: 1, 32, 256>}]} {
    %c0 = arith.constant 0 : index
    %c0_0 = arith.constant 0 : index
    %0 = vector.load %arg2[%c0, %c0_0] : memref<9x256xf32, #tpu.memory_space<vmem>>, vector<9x256xf32>
    %c0_1 = arith.constant 0 : index
    %c0_2 = arith.constant 0 : index
    %1 = vector.load %arg3[%c0_1, %c0_2] : memref<8x27xbf16, #tpu.memory_space<vmem>>, vector<8x27xbf16>
    %c0_3 = arith.constant 0 : index
    %c0_4 = arith.constant 0 : index
    %2 = vector.load %arg4[%c0_3, %c0_4] : memref<16x8xbf16, #tpu.memory_space<vmem>>, vector<16x8xbf16>
    %c0_5 = arith.constant 0 : index
    %c0_6 = arith.constant 0 : index
    %3 = vector.load %arg5[%c0_5, %c0_6] : memref<16x144xbf16, #tpu.memory_space<vmem>>, vector<16x144xbf16>
    %c0_7 = arith.constant 0 : index
    %c0_8 = arith.constant 0 : index
    %4 = vector.load %arg6[%c0_7, %c0_8] : memref<29x16xbf16, #tpu.memory_space<vmem>>, vector<29x16xbf16>
    %c0_9 = arith.constant 0 : index
    %c0_10 = arith.constant 0 : index
    %5 = vector.load %arg7[%c0_9, %c0_10] : memref<32x3xbf16, #tpu.memory_space<vmem>>, vector<32x3xbf16>
    %c0_11 = arith.constant 0 : index
    %c0_12 = arith.constant 0 : index
    %6 = vector.load %arg8[%c0_11, %c0_12] : memref<32x29xbf16, #tpu.memory_space<vmem>>, vector<32x29xbf16>
    %c0_13 = arith.constant 0 : index
    %c0_14 = arith.constant 0 : index
    %7 = vector.load %arg9[%c0_13, %c0_14] : memref<104x1xf32, #tpu.memory_space<vmem>>, vector<8x1xf32>
    %c8 = arith.constant 8 : index
    %c0_15 = arith.constant 0 : index
    %8 = vector.load %arg9[%c8, %c0_15] : memref<104x1xf32, #tpu.memory_space<vmem>>, vector<16x1xf32>
    %c24 = arith.constant 24 : index
    %c0_16 = arith.constant 0 : index
    %9 = vector.load %arg9[%c24, %c0_16] : memref<104x1xf32, #tpu.memory_space<vmem>>, vector<16x1xf32>
    %c40 = arith.constant 40 : index
    %c0_17 = arith.constant 0 : index
    %10 = vector.load %arg9[%c40, %c0_17] : memref<104x1xf32, #tpu.memory_space<vmem>>, vector<29x1xf32>
    %c72 = arith.constant 72 : index
    %c0_18 = arith.constant 0 : index
    %11 = vector.load %arg9[%c72, %c0_18] : memref<104x1xf32, #tpu.memory_space<vmem>>, vector<32x1xf32>
    %c0_19 = arith.constant 0 : index
    %c0_20 = arith.constant 0 : index
    %c0_21 = arith.constant 0 : index
    %12 = vector.load %arg1[%c0_19, %c0_20, %c0_21] : memref<1x3x256xf32, #tpu.memory_space<vmem>>, vector<1x3x256xf32>
    %13 = vector.shape_cast %12 : vector<1x3x256xf32> to vector<3x256xf32>
    %c17_i32 = arith.constant 17 : i32
    %14 = tpu.dynamic_rotate %13 by %c17_i32 dim 1 : vector<3x256xf32>, i32 -> vector<3x256xf32>
    %15 = vector.extract_strided_slice %0 {offsets = [0, 0], sizes = [1, 256], strides = [1, 1]} : vector<9x256xf32> to vector<1x256xf32>
    %16 = vector.shape_cast %15 : vector<1x256xf32> to vector<256xf32>
    %17 = vector.shape_cast %16 : vector<256xf32> to vector<1x256xf32>
    %18 = vector.broadcast %17 : vector<1x256xf32> to vector<3x256xf32>
    %19 = arith.mulf %14, %18 : vector<3x256xf32>
    %c16_i32 = arith.constant 16 : i32
    %20 = tpu.dynamic_rotate %13 by %c16_i32 dim 1 : vector<3x256xf32>, i32 -> vector<3x256xf32>
    %21 = vector.extract_strided_slice %0 {offsets = [1, 0], sizes = [1, 256], strides = [1, 1]} : vector<9x256xf32> to vector<1x256xf32>
    %22 = vector.shape_cast %21 : vector<1x256xf32> to vector<256xf32>
    %23 = vector.shape_cast %22 : vector<256xf32> to vector<1x256xf32>
    %24 = vector.broadcast %23 : vector<1x256xf32> to vector<3x256xf32>
    %25 = arith.mulf %20, %24 : vector<3x256xf32>
    %c15_i32 = arith.constant 15 : i32
    %26 = tpu.dynamic_rotate %13 by %c15_i32 dim 1 : vector<3x256xf32>, i32 -> vector<3x256xf32>
    %27 = vector.extract_strided_slice %0 {offsets = [2, 0], sizes = [1, 256], strides = [1, 1]} : vector<9x256xf32> to vector<1x256xf32>
    %28 = vector.shape_cast %27 : vector<1x256xf32> to vector<256xf32>
    %29 = vector.shape_cast %28 : vector<256xf32> to vector<1x256xf32>
    %30 = vector.broadcast %29 : vector<1x256xf32> to vector<3x256xf32>
    %31 = arith.mulf %26, %30 : vector<3x256xf32>
    %c1_i32 = arith.constant 1 : i32
    %32 = tpu.dynamic_rotate %13 by %c1_i32 dim 1 : vector<3x256xf32>, i32 -> vector<3x256xf32>
    %33 = vector.extract_strided_slice %0 {offsets = [3, 0], sizes = [1, 256], strides = [1, 1]} : vector<9x256xf32> to vector<1x256xf32>
    %34 = vector.shape_cast %33 : vector<1x256xf32> to vector<256xf32>
    %35 = vector.shape_cast %34 : vector<256xf32> to vector<1x256xf32>
    %36 = vector.broadcast %35 : vector<1x256xf32> to vector<3x256xf32>
    %37 = arith.mulf %32, %36 : vector<3x256xf32>
    %38 = vector.extract_strided_slice %0 {offsets = [4, 0], sizes = [1, 256], strides = [1, 1]} : vector<9x256xf32> to vector<1x256xf32>
    %39 = vector.shape_cast %38 : vector<1x256xf32> to vector<256xf32>
    %40 = vector.shape_cast %39 : vector<256xf32> to vector<1x256xf32>
    %41 = vector.broadcast %40 : vector<1x256xf32> to vector<3x256xf32>
    %42 = arith.mulf %13, %41 : vector<3x256xf32>
    %c255_i32 = arith.constant 255 : i32
    %43 = tpu.dynamic_rotate %13 by %c255_i32 dim 1 : vector<3x256xf32>, i32 -> vector<3x256xf32>
    %44 = vector.extract_strided_slice %0 {offsets = [5, 0], sizes = [1, 256], strides = [1, 1]} : vector<9x256xf32> to vector<1x256xf32>
    %45 = vector.shape_cast %44 : vector<1x256xf32> to vector<256xf32>
    %46 = vector.shape_cast %45 : vector<256xf32> to vector<1x256xf32>
    %47 = vector.broadcast %46 : vector<1x256xf32> to vector<3x256xf32>
    %48 = arith.mulf %43, %47 : vector<3x256xf32>
    %c241_i32 = arith.constant 241 : i32
    %49 = tpu.dynamic_rotate %13 by %c241_i32 dim 1 : vector<3x256xf32>, i32 -> vector<3x256xf32>
    %50 = vector.extract_strided_slice %0 {offsets = [6, 0], sizes = [1, 256], strides = [1, 1]} : vector<9x256xf32> to vector<1x256xf32>
    %51 = vector.shape_cast %50 : vector<1x256xf32> to vector<256xf32>
    %52 = vector.shape_cast %51 : vector<256xf32> to vector<1x256xf32>
    %53 = vector.broadcast %52 : vector<1x256xf32> to vector<3x256xf32>
    %54 = arith.mulf %49, %53 : vector<3x256xf32>
    %c240_i32 = arith.constant 240 : i32
    %55 = tpu.dynamic_rotate %13 by %c240_i32 dim 1 : vector<3x256xf32>, i32 -> vector<3x256xf32>
    %56 = vector.extract_strided_slice %0 {offsets = [7, 0], sizes = [1, 256], strides = [1, 1]} : vector<9x256xf32> to vector<1x256xf32>
    %57 = vector.shape_cast %56 : vector<1x256xf32> to vector<256xf32>
    %58 = vector.shape_cast %57 : vector<256xf32> to vector<1x256xf32>
    %59 = vector.broadcast %58 : vector<1x256xf32> to vector<3x256xf32>
    %60 = arith.mulf %55, %59 : vector<3x256xf32>
    %c239_i32 = arith.constant 239 : i32
    %61 = tpu.dynamic_rotate %13 by %c239_i32 dim 1 : vector<3x256xf32>, i32 -> vector<3x256xf32>
    %62 = vector.extract_strided_slice %0 {offsets = [8, 0], sizes = [1, 256], strides = [1, 1]} : vector<9x256xf32> to vector<1x256xf32>
    %63 = vector.shape_cast %62 : vector<1x256xf32> to vector<256xf32>
    %64 = vector.shape_cast %63 : vector<256xf32> to vector<1x256xf32>
    %65 = vector.broadcast %64 : vector<1x256xf32> to vector<3x256xf32>
    %66 = arith.mulf %61, %65 : vector<3x256xf32>
    %67 = tpu.concatenate %19, %25, %31, %37, %42, %48, %54, %60, %66 in 0 : vector<3x256xf32>, vector<3x256xf32>, vector<3x256xf32>, vector<3x256xf32>, vector<3x256xf32>, vector<3x256xf32>, vector<3x256xf32>, vector<3x256xf32>, vector<3x256xf32> -> vector<27x256xf32>
    %68 = arith.truncf %67 : vector<27x256xf32> to vector<27x256xbf16>
    %cst = arith.constant dense<0.000000e+00> : vector<8x256xf32>
    %69 = tpu.matmul %1, %68, %cst {dimension_numbers = #tpu.dot_dimension_numbers<[1], [0], [0], [1], [0, 0, 1, 1], [], []>} : vector<8x27xbf16>, vector<27x256xbf16>, vector<8x256xf32> -> vector<8x256xf32>
    %70 = vector.broadcast %7 : vector<8x1xf32> to vector<8x256xf32>
    %71 = arith.addf %69, %70 : vector<8x256xf32>
    %cst_22 = arith.constant 0.000000e+00 : f32
    %72 = vector.broadcast %cst_22 : f32 to vector<8x256xf32>
    %73 = arith.maximumf %71, %72 : vector<8x256xf32>
    %74 = arith.truncf %73 : vector<8x256xf32> to vector<8x256xbf16>
    %cst_23 = arith.constant dense<0.000000e+00> : vector<16x256xf32>
    %75 = tpu.matmul %2, %74, %cst_23 {dimension_numbers = #tpu.dot_dimension_numbers<[1], [0], [0], [1], [0, 0, 1, 1], [], []>} : vector<16x8xbf16>, vector<8x256xbf16>, vector<16x256xf32> -> vector<16x256xf32>
    %76 = vector.broadcast %8 : vector<16x1xf32> to vector<16x256xf32>
    %77 = arith.addf %75, %76 : vector<16x256xf32>
    %cst_24 = arith.constant 0.000000e+00 : f32
    %78 = vector.broadcast %cst_24 : f32 to vector<16x256xf32>
    %79 = arith.maximumf %77, %78 : vector<16x256xf32>
    %c17_i32_25 = arith.constant 17 : i32
    %80 = tpu.dynamic_rotate %79 by %c17_i32_25 dim 1 : vector<16x256xf32>, i32 -> vector<16x256xf32>
    %81 = vector.extract_strided_slice %0 {offsets = [0, 0], sizes = [1, 256], strides = [1, 1]} : vector<9x256xf32> to vector<1x256xf32>
    %82 = vector.shape_cast %81 : vector<1x256xf32> to vector<256xf32>
    %83 = vector.shape_cast %82 : vector<256xf32> to vector<1x256xf32>
    %84 = vector.broadcast %83 : vector<1x256xf32> to vector<16x256xf32>
    %85 = arith.mulf %80, %84 : vector<16x256xf32>
    %c16_i32_26 = arith.constant 16 : i32
    %86 = tpu.dynamic_rotate %79 by %c16_i32_26 dim 1 : vector<16x256xf32>, i32 -> vector<16x256xf32>
    %87 = vector.extract_strided_slice %0 {offsets = [1, 0], sizes = [1, 256], strides = [1, 1]} : vector<9x256xf32> to vector<1x256xf32>
    %88 = vector.shape_cast %87 : vector<1x256xf32> to vector<256xf32>
    %89 = vector.shape_cast %88 : vector<256xf32> to vector<1x256xf32>
    %90 = vector.broadcast %89 : vector<1x256xf32> to vector<16x256xf32>
    %91 = arith.mulf %86, %90 : vector<16x256xf32>
    %c15_i32_27 = arith.constant 15 : i32
    %92 = tpu.dynamic_rotate %79 by %c15_i32_27 dim 1 : vector<16x256xf32>, i32 -> vector<16x256xf32>
    %93 = vector.extract_strided_slice %0 {offsets = [2, 0], sizes = [1, 256], strides = [1, 1]} : vector<9x256xf32> to vector<1x256xf32>
    %94 = vector.shape_cast %93 : vector<1x256xf32> to vector<256xf32>
    %95 = vector.shape_cast %94 : vector<256xf32> to vector<1x256xf32>
    %96 = vector.broadcast %95 : vector<1x256xf32> to vector<16x256xf32>
    %97 = arith.mulf %92, %96 : vector<16x256xf32>
    %c1_i32_28 = arith.constant 1 : i32
    %98 = tpu.dynamic_rotate %79 by %c1_i32_28 dim 1 : vector<16x256xf32>, i32 -> vector<16x256xf32>
    %99 = vector.extract_strided_slice %0 {offsets = [3, 0], sizes = [1, 256], strides = [1, 1]} : vector<9x256xf32> to vector<1x256xf32>
    %100 = vector.shape_cast %99 : vector<1x256xf32> to vector<256xf32>
    %101 = vector.shape_cast %100 : vector<256xf32> to vector<1x256xf32>
    %102 = vector.broadcast %101 : vector<1x256xf32> to vector<16x256xf32>
    %103 = arith.mulf %98, %102 : vector<16x256xf32>
    %104 = vector.extract_strided_slice %0 {offsets = [4, 0], sizes = [1, 256], strides = [1, 1]} : vector<9x256xf32> to vector<1x256xf32>
    %105 = vector.shape_cast %104 : vector<1x256xf32> to vector<256xf32>
    %106 = vector.shape_cast %105 : vector<256xf32> to vector<1x256xf32>
    %107 = vector.broadcast %106 : vector<1x256xf32> to vector<16x256xf32>
    %108 = arith.mulf %79, %107 : vector<16x256xf32>
    %c255_i32_29 = arith.constant 255 : i32
    %109 = tpu.dynamic_rotate %79 by %c255_i32_29 dim 1 : vector<16x256xf32>, i32 -> vector<16x256xf32>
    %110 = vector.extract_strided_slice %0 {offsets = [5, 0], sizes = [1, 256], strides = [1, 1]} : vector<9x256xf32> to vector<1x256xf32>
    %111 = vector.shape_cast %110 : vector<1x256xf32> to vector<256xf32>
    %112 = vector.shape_cast %111 : vector<256xf32> to vector<1x256xf32>
    %113 = vector.broadcast %112 : vector<1x256xf32> to vector<16x256xf32>
    %114 = arith.mulf %109, %113 : vector<16x256xf32>
    %c241_i32_30 = arith.constant 241 : i32
    %115 = tpu.dynamic_rotate %79 by %c241_i32_30 dim 1 : vector<16x256xf32>, i32 -> vector<16x256xf32>
    %116 = vector.extract_strided_slice %0 {offsets = [6, 0], sizes = [1, 256], strides = [1, 1]} : vector<9x256xf32> to vector<1x256xf32>
    %117 = vector.shape_cast %116 : vector<1x256xf32> to vector<256xf32>
    %118 = vector.shape_cast %117 : vector<256xf32> to vector<1x256xf32>
    %119 = vector.broadcast %118 : vector<1x256xf32> to vector<16x256xf32>
    %120 = arith.mulf %115, %119 : vector<16x256xf32>
    %c240_i32_31 = arith.constant 240 : i32
    %121 = tpu.dynamic_rotate %79 by %c240_i32_31 dim 1 : vector<16x256xf32>, i32 -> vector<16x256xf32>
    %122 = vector.extract_strided_slice %0 {offsets = [7, 0], sizes = [1, 256], strides = [1, 1]} : vector<9x256xf32> to vector<1x256xf32>
    %123 = vector.shape_cast %122 : vector<1x256xf32> to vector<256xf32>
    %124 = vector.shape_cast %123 : vector<256xf32> to vector<1x256xf32>
    %125 = vector.broadcast %124 : vector<1x256xf32> to vector<16x256xf32>
    %126 = arith.mulf %121, %125 : vector<16x256xf32>
    %c239_i32_32 = arith.constant 239 : i32
    %127 = tpu.dynamic_rotate %79 by %c239_i32_32 dim 1 : vector<16x256xf32>, i32 -> vector<16x256xf32>
    %128 = vector.extract_strided_slice %0 {offsets = [8, 0], sizes = [1, 256], strides = [1, 1]} : vector<9x256xf32> to vector<1x256xf32>
    %129 = vector.shape_cast %128 : vector<1x256xf32> to vector<256xf32>
    %130 = vector.shape_cast %129 : vector<256xf32> to vector<1x256xf32>
    %131 = vector.broadcast %130 : vector<1x256xf32> to vector<16x256xf32>
    %132 = arith.mulf %127, %131 : vector<16x256xf32>
    %133 = tpu.concatenate %85, %91, %97, %103, %108, %114, %120, %126, %132 in 0 : vector<16x256xf32>, vector<16x256xf32>, vector<16x256xf32>, vector<16x256xf32>, vector<16x256xf32>, vector<16x256xf32>, vector<16x256xf32>, vector<16x256xf32>, vector<16x256xf32> -> vector<144x256xf32>
    %134 = arith.truncf %133 : vector<144x256xf32> to vector<144x256xbf16>
    %cst_33 = arith.constant dense<0.000000e+00> : vector<16x256xf32>
    %135 = tpu.matmul %3, %134, %cst_33 {dimension_numbers = #tpu.dot_dimension_numbers<[1], [0], [0], [1], [0, 0, 1, 1], [], []>} : vector<16x144xbf16>, vector<144x256xbf16>, vector<16x256xf32> -> vector<16x256xf32>
    %136 = vector.broadcast %9 : vector<16x1xf32> to vector<16x256xf32>
    %137 = arith.addf %135, %136 : vector<16x256xf32>
    %cst_34 = arith.constant 0.000000e+00 : f32
    %138 = vector.broadcast %cst_34 : f32 to vector<16x256xf32>
    %139 = arith.maximumf %137, %138 : vector<16x256xf32>
    %140 = arith.truncf %139 : vector<16x256xf32> to vector<16x256xbf16>
    %cst_35 = arith.constant dense<0.000000e+00> : vector<29x256xf32>
    %141 = tpu.matmul %4, %140, %cst_35 {dimension_numbers = #tpu.dot_dimension_numbers<[1], [0], [0], [1], [0, 0, 1, 1], [], []>} : vector<29x16xbf16>, vector<16x256xbf16>, vector<29x256xf32> -> vector<29x256xf32>
    %142 = vector.broadcast %10 : vector<29x1xf32> to vector<29x256xf32>
    %143 = arith.addf %141, %142 : vector<29x256xf32>
    %cst_36 = arith.constant 0.000000e+00 : f32
    %144 = vector.broadcast %cst_36 : f32 to vector<29x256xf32>
    %145 = arith.maximumf %143, %144 : vector<29x256xf32>
    %146 = arith.truncf %13 : vector<3x256xf32> to vector<3x256xbf16>
    %cst_37 = arith.constant dense<0.000000e+00> : vector<32x256xf32>
    %147 = tpu.matmul %5, %146, %cst_37 {dimension_numbers = #tpu.dot_dimension_numbers<[1], [0], [0], [1], [0, 0, 1, 1], [], []>} : vector<32x3xbf16>, vector<3x256xbf16>, vector<32x256xf32> -> vector<32x256xf32>
    %148 = arith.truncf %145 : vector<29x256xf32> to vector<29x256xbf16>
    %cst_38 = arith.constant dense<0.000000e+00> : vector<32x256xf32>
    %149 = tpu.matmul %6, %148, %cst_38 {dimension_numbers = #tpu.dot_dimension_numbers<[1], [0], [0], [1], [0, 0, 1, 1], [], []>} : vector<32x29xbf16>, vector<29x256xbf16>, vector<32x256xf32> -> vector<32x256xf32>
    %150 = arith.addf %147, %149 : vector<32x256xf32>
    %151 = vector.broadcast %11 : vector<32x1xf32> to vector<32x256xf32>
    %152 = arith.addf %150, %151 : vector<32x256xf32>
    %c0_39 = arith.constant 0 : index
    %c0_40 = arith.constant 0 : index
    %c0_41 = arith.constant 0 : index
    %153 = vector.load %arg10[%c0_39, %c0_40, %c0_41] : memref<1x32x256xf32, #tpu.memory_space<vmem>>, vector<1x32x256xf32>
    %154 = vector.shape_cast %153 : vector<1x32x256xf32> to vector<32x256xf32>
    %155 = vector.shape_cast %152 : vector<32x256xf32> to vector<1x32x256xf32>
    tpu.vector_store %arg10[%c0_39, %c0_40, %c0_41], %155 {strides = array<i32>} : memref<1x32x256xf32, #tpu.memory_space<vmem>>, vector<1x32x256xf32>,
    return
  }
  func.func @transform_0(%arg0: i32) -> (i32, i32, i32) {
    %c0_i32 = arith.constant 0 : i32
    %c0_i32_0 = arith.constant 0 : i32
    %c0_i32_1 = arith.constant 0 : i32
    return %arg0, %c0_i32, %c0_i32_0 : i32, i32, i32
  }
  func.func @transform_1(%arg0: i32) -> (i32, i32) {
    %c0_i32 = arith.constant 0 : i32
    %c0_i32_0 = arith.constant 0 : i32
    %c0_i32_1 = arith.constant 0 : i32
    return %c0_i32, %c0_i32_0 : i32, i32
  }
  func.func @transform_2(%arg0: i32) -> (i32, i32) {
    %c0_i32 = arith.constant 0 : i32
    %c0_i32_0 = arith.constant 0 : i32
    %c0_i32_1 = arith.constant 0 : i32
    return %c0_i32, %c0_i32_0 : i32, i32
  }
  func.func @transform_3(%arg0: i32) -> (i32, i32) {
    %c0_i32 = arith.constant 0 : i32
    %c0_i32_0 = arith.constant 0 : i32
    %c0_i32_1 = arith.constant 0 : i32
    return %c0_i32, %c0_i32_0 : i32, i32
  }
  func.func @transform_4(%arg0: i32) -> (i32, i32) {
    %c0_i32 = arith.constant 0 : i32
    %c0_i32_0 = arith.constant 0 : i32
    %c0_i32_1 = arith.constant 0 : i32
    return %c0_i32, %c0_i32_0 : i32, i32
  }
  func.func @transform_5(%arg0: i32) -> (i32, i32) {
    %c0_i32 = arith.constant 0 : i32
    %c0_i32_0 = arith.constant 0 : i32
    %c0_i32_1 = arith.constant 0 : i32
    return %c0_i32, %c0_i32_0 : i32, i32
  }
  func.func @transform_6(%arg0: i32) -> (i32, i32) {
    %c0_i32 = arith.constant 0 : i32
    %c0_i32_0 = arith.constant 0 : i32
    %c0_i32_1 = arith.constant 0 : i32
    return %c0_i32, %c0_i32_0 : i32, i32
  }
  func.func @transform_7(%arg0: i32) -> (i32, i32) {
    %c0_i32 = arith.constant 0 : i32
    %c0_i32_0 = arith.constant 0 : i32
    %c0_i32_1 = arith.constant 0 : i32
    return %c0_i32, %c0_i32_0 : i32, i32
  }
  func.func @transform_8(%arg0: i32) -> (i32, i32) {
    %c0_i32 = arith.constant 0 : i32
    %c0_i32_0 = arith.constant 0 : i32
    %c0_i32_1 = arith.constant 0 : i32
    return %c0_i32, %c0_i32_0 : i32, i32
  }
  func.func @transform_9(%arg0: i32) -> (i32, i32, i32) {
    %c0_i32 = arith.constant 0 : i32
    %c0_i32_0 = arith.constant 0 : i32
    %c0_i32_1 = arith.constant 0 : i32
    return %arg0, %c0_i32, %c0_i32_0 : i32, i32, i32
  }
}

</mosaic_0001>

<bundles_post_ra>
// kernel: scm_forward.1
= control target key start
LH: loop header
LB: loop body
LE: loop exit
PB: predicated region body
PF: predicated region fallthrough
CT: control target
= control target key end

     0   :  { %s1428_s30 = smov 0   ;;  %s1941_s0 = inlined_call_operand.vmem [shape: f32[2,3,256], index: 0, kind: input, shape index: {}]   ;;  %s1942_s1 = inlined_call_operand.vmem [shape: f32[9,256], index: 1, kind: input, shape index: {}]   ;;  %s1943_s2 = inlined_call_operand.vmem [shape: bf16[8,27], index: 2, kind: input, shape index: {}]   ;;  %s1944_s3 = inlined_call_operand.vmem [shape: bf16[16,8], index: 3, kind: input, shape index: {}]   ;;  %s1945_s4 = inlined_call_operand.vmem [shape: bf16[16,144], index: 4, kind: input, shape index: {}]   ;;  %s1946_s5 = inlined_call_operand.vmem [shape: bf16[29,16], index: 5, kind: input, shape index: {}]   ;;  %s1947_s6 = inlined_call_operand.vmem [shape: bf16[32,3], index: 6, kind: input, shape index: {}]   ;;  %s1948_s7 = inlined_call_operand.vmem [shape: bf16[32,29], index: 7, kind: input, shape index: {}]   ;;  %s1949_s8 = inlined_call_operand.vmem [shape: f32[104,1], index: 8, kind: input, shape index: {}]   ;;  %s1950_s9 = inlined_call_operand.vmem [shape: f32[2,32,256], index: 9, kind: output, shape index: {}]  }
   0x1 LB: > { %s1293_s10 = sadd.s32 4294967295, %s1366_s30   ;;  %p1297_p0 = scmp.ge.s32.totalorder %s1366_s30, 1  ;;  %s1366_s30 = sphi %s1428_s30, %s19_s30  }
   0x2   : > { %p287_p1 = scmp.lt.s32.totalorder %s1366_s30, 3 }
   0x4   : > { %p288_p2 = pnand %p1297_p0, %p287_p1 }
   0x5   : > { %p323_p3 = scmp.lt.s32.totalorder (!%p288_p2), %s1293_s10, 1  ;;  %s1368_s15 = smov (!%p288_p2), 113  }
   0x6   : > { %291 = sbr.rel (%p288_p2) target bundleno = 1411 (0x583), region = 56  ;;  %s1369_s16 = smov (!%p288_p2), 127  }
   0x7   : > { %s1370_s17 = smov (!%p288_p2), 112   ;;  %s1371_s18 = smov (!%p288_p2), 111  }
   0x8   : > { %s1372_s19 = smov (!%p288_p2), 15   ;;  %s1373_s20 = smov (!%p288_p2), 1  }
   0x9   : > { %s1374_s21 = smov (!%p288_p2), 16   ;;  %s1376_s22 = smov (!%p288_p2), 17  }
   0xb   : > { %s1952_s10 = smov (!%p323_p3, %s1293_s10), 1  ;;  %v1375_v2 = vmov 0   ;;  %v355_v3 = vld [vmem:[%s1949_s8] sm:$0xff]  ;;  %v376_v4 = vlaneseq  ;;  %v1500_v11 = vld [vmem:[%s1942_s1 + $0x8] sm:$0xff]  ;;  %vm580_vm3 = vcmask 1044480   ;;  %vm565_vm5 = vcmask 1045504  }
   0xc   : > { %s1325_s11 = sshll.u32 %s1952_s10, 3  ;;  %636 = vmatprep.mubr.bf16.mxu0 %v1375_v2  ;;  %1347 = vset.pattern.permute.xlu0 %v1375_v2  ;;  %v1495_v10 = vld [vmem:[%s1942_s1] sm:$0xff]  ;;  %vm577_vm6 = vcmask 1041408   ;;  %v1377_v30 = vmov 65535   ;;  %v1555_v42 = vld [vmem:[%s1942_s1 + $0x10] ss:$0 sm:$0xff] }
   0xd   : > { %s327_s14 = scalar_lea.vmem %s1941_s0, %s1325_s11  ;;  %706 = vmatprep.mubr.bf16.mxu1 %v1375_v2  ;;  %1348 = vset.pattern.permute.xlu1 %v1375_v2  ;;  %v1487_v5 = vshrl.u32 %v376_v4, 7  ;;  %v1489_v6 = vand.u32 127, %v376_v4  ;;  %v596_v31 = vsel %vm580_vm3, 4294967295, %v1377_v30  ;;  %v1560_v43 = vld [vmem:[%s1942_s1 + $0x18] ss:$0 sm:$0xff]  ;;  %vm568_vm10 = vcmask 1040384  }
   0xe   : > { %v1442_v0 = vld [vmem:[%s327_s14] sm:$0x77]  ;;  %v597_v60 = vsel %vm565_vm5, %v596_v31, 0  ;;  %vm571_vm12 = vcmask 1043456   ;;  %vm562_vm13 = vcmask 1042432   ;;  %vm574_vm14 = vcmask 1046528  }
   0xf   : > { %472 = vrot.lane.b32.xlu1 %v1442_v0, %s1368_s15  ;;  %455 = vrot.lane.b32.xlu0 %v1442_v0, %s1369_s16  ;;  %v1450_v1 = vcombine.high %v1442_v0, %v1442_v0  ;;  %v481_v7 = vsub.s32 6, %v1487_v5  ;;  %vm476_vm0 = vcmp.lt.s32.totalorder %v1489_v6, 113  ;;  %v498_v12 = vsub.s32 7, %v1487_v5  ;;  %s1326_s28 = sshll.u32 %s1952_s10, 6 }
  0x10   : > { %v464_v13 = vsub.s32 5, %v1487_v5  ;;  %vm493_vm1 = vcmp.lt.s32.totalorder %v1489_v6, 112  ;;  %vm459_vm2 = vcmp.lt.s32.totalorder %v1489_v6, 127  ;;  %vm510_vm4 = vcmp.lt.s32.totalorder %v1489_v6, 111 }
  0x11   : > { %v1506_v14 = vrot.slane %v1495_v10, %v481_v7  ;;  %v1509_v15 = vrot.slane %v1500_v11, %v481_v7  ;;  %v1518_v20 = vrot.slane %v1495_v10, %v498_v12  ;;  %v1521_v21 = vrot.slane %v1500_v11, %v498_v12 }
  0x12   : > { %v1524_v22 = vrot.slane %v1495_v10, %v464_v13  ;;  %v1527_v23 = vrot.slane %v1500_v11, %v464_v13  ;;  %v444_v26 = vsub.s32 4, %v1487_v5  ;;  %v417_v29 = vsub.s32 2, %v1487_v5 }
  0x13   : > { %489 = vrot.lane.b32.xlu0 %v1442_v0, %s1370_s17  ;;  %474 = vrot.lane.b32.xlu1 %v1450_v1, %s1368_s15  ;;  %vm412_vm7 = vcmp.lt.s32.totalorder %v1489_v6, 15  ;;  %v434_v54 = vsub.s32 3, %v1487_v5  ;;  %vm429_vm8 = vcmp.lt.s32.totalorder %v1489_v6, 1  ;;  %vm395_vm9 = vcmp.lt.s32.totalorder %v1489_v6, 16 }
  0x14   : > { %v1563_v44 = vrot.slane %v1495_v10, %v444_v26  ;;  %v1566_v45 = vrot.slane %v1500_v11, %v444_v26  ;;  %v1593_v4 = vrot.slane %v1500_v11, %v417_v29  ;;  %vm378_vm11 = vcmp.lt.s32.totalorder %v1489_v6, 17 }
  0x15   : > { %vm592_vm15 = vcmask 220160  }
  0x16   : > { %v452_v62 = vcombine.low %v1563_v44, %v1566_v45 }
  0x17   : > { %491 = vrot.lane.b32.xlu1 %v1450_v1, %s1370_s17  ;;  %457 = vrot.lane.b32.xlu0 %v1450_v1, %s1369_s16 }
  0x1b   : > { %508 = vrot.lane.b32.xlu1 %v1450_v1, %s1371_s18  ;;  %506 = vrot.lane.b32.xlu0 %v1442_v0, %s1371_s18 }
  0x1f   : > { %410 = vrot.lane.b32.xlu1 %v1450_v1, %s1372_s19  ;;  %408 = vrot.lane.b32.xlu0 %v1442_v0, %s1372_s19 }
  0x23   : > { %427 = vrot.lane.b32.xlu1 %v1450_v1, %s1373_s20  ;;  %425 = vrot.lane.b32.xlu0 %v1442_v0, %s1373_s20 }
  0x27   : > { %393 = vrot.lane.b32.xlu1 %v1450_v1, %s1374_s21  ;;  %391 = vrot.lane.b32.xlu0 %v1442_v0, %s1374_s21 }
  0x2b   : > { %374 = vrot.lane.b32.xlu1 %v1450_v1, %s1376_s22  ;;  %372 = vrot.lane.b32.xlu0 %v1442_v0, %s1376_s22 }
  0x2f   : > { %589 = vperm.xlu0 %1347, %v355_v3   ;;  %v1590_v3 = vrot.slane %v1495_v10, %v417_v29 }
  0x81   : > { %v473_v8 = vpop.permute.xlu1 %472  ;;  %v456_v9 = vpop.permute.xlu0 %455 }
  0x85   : > { %v490_v16 = vpop.permute.xlu0 %489  ;;  %v475_v17 = vpop.permute.xlu1 %474 }
  0x86   : > { %v477_v18 = vsel %vm476_vm0, %v473_v8, %v475_v17  ;;  %v478_v19 = vsel %vm476_vm0, %v475_v17, %v473_v8 }
  0x87   : > { %v487_v24 = vmul.f32 %v1506_v14, %v477_v18  ;;  %v488_v25 = vmul.f32 %v1509_v15, %v478_v19  ;;  %v1604_v18 = vrot.slane %v1500_v11, %v434_v54 }
  0x89   : > { %v492_v27 = vpop.permute.xlu1 %491  ;;  %v458_v28 = vpop.permute.xlu0 %457  ;;  %v552_v40 = vrot.slane %v487_v24, 6  ;;  %v553_v41 = vrot.slane %v488_v25, 6  ;;  %v400_v24 = vsub.s32 1, %v1487_v5  ;;  %v454_v25 = vmul.f32 %v452_v62, %v1442_v0 }
  0x8a   : > { %v494_v32 = vsel %vm493_vm1, %v490_v16, %v492_v27  ;;  %v495_v33 = vsel %vm493_vm1, %v492_v27, %v490_v16  ;;  %v460_v34 = vsel %vm459_vm2, %v456_v9, %v458_v28  ;;  %v461_v35 = vsel %vm459_vm2, %v458_v28, %v456_v9 }
  0x8b   : > { %v504_v36 = vmul.f32 %v1518_v20, %v494_v32  ;;  %v505_v37 = vmul.f32 %v1521_v21, %v495_v33  ;;  %v1547_v38 = vmul.f32 %v1524_v22, %v460_v34  ;;  %v1550_v39 = vmul.f32 %v1527_v23, %v461_v35 }
  0x8c   : > { %v1601_v16 = vrot.slane %v1495_v10, %v434_v54  ;;  %v383_v33 = vsub.s32 0, %v1487_v5 }
  0x8d   : > { %v558_v46 = vrot.slane %v504_v36, 3  ;;  %v559_v47 = vrot.slane %v505_v37, 3  ;;  %v546_v48 = vrot.slane %v1547_v38, 1  ;;  %v547_v49 = vrot.slane %v1550_v39, 1  ;;  %v509_v50 = vpop.permute.xlu1 %508  ;;  %v507_v51 = vpop.permute.xlu0 %506  ;;  %v356_v39 = vld [vmem:[%s1949_s8 + $0x8] sm:$0xff]  ;;  %v357_v38 = vld [vmem:[%s1949_s8 + $0x10] sm:$0xff] }
  0x8e   : > { %v511_v52 = vsel %vm510_vm4, %v507_v51, %v509_v50  ;;  %v512_v53 = vsel %vm510_vm4, %v509_v50, %v507_v51  ;;  %v1619_v36 = vrot.slane %v1495_v10, %v400_v24  ;;  %v1622_v37 = vrot.slane %v1500_v11, %v400_v24  ;;  %651 = vperm.xlu1 %1348, %v356_v39   ;;  %v365_v39 = vld [vmem:[%s1949_s8 + $0x50] sm:$0xff] }
  0x8f   : > { %v521_v55 = vmul.f32 %v1555_v42, %v511_v52  ;;  %v522_v56 = vmul.f32 %v1560_v43, %v512_v53  ;;  %v579_v57 = vsel %vm577_vm6, %v547_v49, %v553_v41  ;;  %v578_v58 = vsel %vm577_vm6, %v546_v48, %v552_v40 }
  0x90   : > { %v582_v59 = vsel %vm580_vm3, %v579_v57, %v559_v47  ;;  %v581_v61 = vsel %vm580_vm3, %v578_v58, %v558_v46  ;;  %v542_v40 = vcombine.low %v454_v25, %v454_v25  ;;  %v1630_v54 = vrot.slane %v1495_v10, %v383_v33 }
  0x91   : > { %v411_v63 = vpop.permute.xlu1 %410  ;;  %v409_v7 = vpop.permute.xlu0 %408  ;;  %v586_v8 = vpack.c.bf16 %v522_v56, %v582_v59  ;;  %v585_v9 = vpack.c.bf16 %v521_v55, %v581_v61  ;;  %v1633_v55 = vrot.slane %v1500_v11, %v383_v33  ;;  %vm664_vm3 = vcmask 64512  }
  0x92   : > { %v413_v12 = vsel %vm412_vm7, %v409_v7, %v411_v63  ;;  %v414_v13 = vsel %vm412_vm7, %v411_v63, %v409_v7  ;;  %656 = vperm.xlu1 %1348, %v357_v38   ;;  %v366_v38 = vld [vmem:[%s1949_s8 + $0x58] sm:$0xff] }
  0x93   : > { %v602_v17 = vand.u32 %v597_v60, %v586_v8  ;;  %v599_v19 = vand.u32 %v597_v60, %v585_v9  ;;  %v423_v26 = vmul.f32 %v1590_v3, %v414_v13  ;;  %v424_v27 = vmul.f32 %v1593_v4, %v413_v12 }
  0x95   : > { %v428_v28 = vpop.permute.xlu1 %427  ;;  %616 = vmatprep.subr.bf16.mxu0 %v602_v17  ;;  %v426_v29 = vpop.permute.xlu0 %425  ;;  %v531_v41 = vrot.slane %v423_v26, 2  ;;  %v532_v46 = vrot.slane %v424_v27, 2 }
  0x96   : > { %v430_v31 = vsel %vm429_vm8, %v426_v29, %v428_v28  ;;  %v431_v32 = vsel %vm429_vm8, %v428_v28, %v426_v29  ;;  %617 = vmatpush1.bf16.msra.mxu0 %v599_v19  ;;  %v338_v29 = vld [vmem:[%s1943_s2] sm:$0xf] }
  0x97   : > { %v440_v34 = vmul.f32 %v1601_v16, %v431_v32  ;;  %v441_v35 = vmul.f32 %v1604_v18, %v430_v31 }
  0x99   : > { %v537_v47 = vrot.slane %v440_v34, 7  ;;  %v538_v50 = vrot.slane %v441_v35, 7  ;;  %v394_v5 = vpop.permute.xlu1 %393  ;;  %v392_v51 = vpop.permute.xlu0 %391 }
  0x9a   : > { %v396_v52 = vsel %vm395_vm9, %v392_v51, %v394_v5  ;;  %v397_v53 = vsel %vm395_vm9, %v394_v5, %v392_v51  ;;  %v1350_v5 = vld [vmem:[%s1944_s3] sm:$0xff]  }
  0x9b   : > { %v569_v56 = vsel %vm568_vm10, %v531_v41, %v537_v47  ;;  %v570_v57 = vsel %vm568_vm10, %v532_v46, %v538_v50  ;;  %v406_v58 = vmul.f32 %v1619_v36, %v397_v53  ;;  %v407_v59 = vmul.f32 %v1622_v37, %v396_v52 }
  0x9c   : > { %v573_v11 = vsel %vm571_vm12, %v570_v57, %v454_v25  ;;  %v572_v63 = vsel %vm571_vm12, %v569_v56, %v542_v40 }
  0x9d   : > { %v375_v60 = vpop.permute.xlu1 %374  ;;  %v373_v61 = vpop.permute.xlu0 %372  ;;  %v525_v7 = vrot.slane %v406_v58, 5  ;;  %v526_v8 = vrot.slane %v407_v59, 5  ;;  %v576_v24 = vsel %vm574_vm14, %v573_v11, %v547_v49  ;;  %v575_v25 = vsel %vm574_vm14, %v572_v63, %v546_v48 }
  0x9e   : > { %v379_v62 = vsel %vm378_vm11, %v373_v61, %v375_v60  ;;  %v380_v10 = vsel %vm378_vm11, %v375_v60, %v373_v61 }
  0x9f   : > { %v389_v9 = vmul.f32 %v1630_v54, %v380_v10  ;;  %v390_v12 = vmul.f32 %v1633_v55, %v379_v62 }
  0xa1   : > { %v564_v13 = vsel %vm562_vm13, %v390_v12, %v526_v8  ;;  %v563_v17 = vsel %vm562_vm13, %v389_v9, %v525_v7 }
  0xa2   : > { %v567_v19 = vsel %vm565_vm5, %v564_v13, %v532_v46  ;;  %v566_v26 = vsel %vm565_vm5, %v563_v17, %v531_v41 }
  0xa3   : > { %v584_v27 = vpack.c.bf16 %v576_v24, %v567_v19  ;;  %v583_v28 = vpack.c.bf16 %v575_v25, %v566_v26  ;;  %v359_v24 = vld [vmem:[%s1949_s8 + $0x20] sm:$0xff]  ;;  %v362_v26 = vld [vmem:[%s1949_s8 + $0x38] sm:$0xff] }
  0xa4   : > { %v363_v25 = vld [vmem:[%s1949_s8 + $0x40] sm:$0x1f] }
  0xa5   : > { %618 = vmatprep.subr.bf16.mxu0 %v584_v27  ;;  %v360_v27 = vld [vmem:[%s1949_s8 + $0x28] sm:$0xff] }
  0xa6   : > { %619 = vmatpush1.bf16.msra.mxu0 %v583_v28  ;;  %v361_v28 = vld [vmem:[%s1949_s8 + $0x30] sm:$0xff] }
  0xa9   : > { %1304 = vmatmul.mubr.msk.bf16.vlgmr.msra.gmra.mxu0 %vm592_vm15, %v338_v29  ;;  %v364_v29 = vld [vmem:[%s1949_s8 + $0x48] sm:$0xff] }
  0xaa   : > { %1011 = vmatprep.mubr.bf16.mxu0 %v1375_v2  ;;  %v590_v48 = vpop.permute.xlu0 %589 }
 0x109   : > { %v652_v51 = vpop.permute.xlu1 %651 }
 0x10d   : > { %v657_v59 = vpop.permute.xlu1 %656 }
 0x169   : > { %v638_v49 = vpop.f32.mrf.mxu0 }
 0x16a   : > { %v639_v31 = vadd.f32 %v638_v49, %v590_v48 }
 0x16b   : > { %v640_v32 = vpop.f32.mrf.mxu0 }
 0x16c   : > { %v645_v33 = vmax.f32 %v639_v31, 0.0  ;;  %v641_v34 = vadd.f32 %v640_v32, %v590_v48  ;;  %v367_v48 = vld [vmem:[%s1949_s8 + $0x60] sm:$0xff] }
 0x16d   : > { %v642_v35 = vpop.f32.mrf.mxu0 }
 0x16e   : > { %v646_v40 = vmax.f32 %v641_v34, 0.0  ;;  %v647_v41 = vpack.c.bf16 %v645_v33, %v645_v33 }
 0x16f   : > { %v643_v46 = vpop.f32.mrf.mxu0 }
 0x170   : > { %v648_v47 = vpack.c.bf16 %v646_v40, %v646_v40  ;;  %v669_v50 = vsel %vm571_vm12, %v647_v41, 0 }
 0x172   : > { %1306 = vmatprep.subr.msk.bf16.mxu1 %vm571_vm12, %v648_v47  ;;  %vm890_vm12 = vcmask 130048  }
 0x173   : > { %689 = vmatpush1.bf16.msra.mxu1 %v669_v50 }
 0x176   : > { %1307 = vmatmul.mubr.msk.bf16.vlgmr.msra.gmra.mxu1 %vm664_vm3, %v1350_v5 }
 0x236   : > { %v708_v52 = vpop.f32.mrf.mxu1 }
 0x237   : > { %v709_v53 = vadd.f32 %v708_v52, %v652_v51 }
 0x238   : > { %v710_v56 = vpop.f32.mrf.mxu1 }
 0x239   : > { %v717_v57 = vmax.f32 %v709_v53, 0.0  ;;  %v711_v58 = vadd.f32 %v710_v56, %v652_v51 }
 0x23a   : > { %v712_v60 = vpop.f32.mrf.mxu1 }
 0x23b   : > { %v713_v61 = vadd.f32 %v712_v60, %v657_v59  ;;  %821 = vrot.lane.b32.xlu0 %v717_v57, %s1370_s17  ;;  %v718_v10 = vmax.f32 %v711_v58, 0.0  ;;  %v1674_v8 = vmul.f32 %v717_v57, %v1563_v44 }
 0x23c   : > { %v714_v62 = vpop.f32.mrf.mxu1 }
 0x23d   : > { %v719_v11 = vmax.f32 %v713_v61, 0.0  ;;  %v715_v63 = vadd.f32 %v714_v62, %v657_v59  ;;  %v1680_v12 = vmul.f32 %v718_v10, %v1566_v45 }
 0x23f   : > { %v720_v7 = vmax.f32 %v715_v63, 0.0  ;;  %823 = vrot.lane.b32.xlu1 %v719_v11, %s1370_s17  ;;  %805 = vrot.lane.b32.xlu0 %v717_v57, %s1368_s15  ;;  %v1677_v9 = vmul.f32 %v719_v11, %v1563_v44  ;;  %v1351_v44 = vld [vmem:[%s1945_s4 + $0x4] ss:$8 sps:$4 sm:$0xff]  }
 0x240   : > { %1310 = vmatprep.mubr.msk.bf16.mxu1 %vm890_vm12, %v1351_v44 }
 0x241   : > { %v1683_v13 = vmul.f32 %v720_v7, %v1566_v45  ;;  %v861_v17 = vpack.c.bf16 %v1677_v9, %v1674_v8  ;;  %v358_v45 = vld [vmem:[%s1949_s8 + $0x18] sm:$0xff] }
 0x243   : > { %807 = vrot.lane.b32.xlu1 %v719_v11, %s1368_s15  ;;  %789 = vrot.lane.b32.xlu0 %v717_v57, %s1369_s16  ;;  %v862_v19 = vpack.c.bf16 %v1683_v13, %v1680_v12 }
 0x247   : > { %791 = vrot.lane.b32.xlu1 %v719_v11, %s1369_s16  ;;  %769 = vrot.lane.b32.xlu0 %v717_v57, %s1373_s20 }
 0x24b   : > { %771 = vrot.lane.b32.xlu1 %v719_v11, %s1373_s20  ;;  %753 = vrot.lane.b32.xlu0 %v717_v57, %s1372_s19 }
 0x24f   : > { %755 = vrot.lane.b32.xlu1 %v719_v11, %s1372_s19  ;;  %737 = vrot.lane.b32.xlu0 %v717_v57, %s1374_s21 }
 0x253   : > { %739 = vrot.lane.b32.xlu1 %v719_v11, %s1374_s21  ;;  %721 = vrot.lane.b32.xlu0 %v717_v57, %s1376_s22 }
 0x257   : > { %723 = vrot.lane.b32.xlu1 %v719_v11, %s1376_s22  ;;  %825 = vrot.lane.b32.xlu0 %v718_v10, %s1370_s17 }
 0x25b   : > { %827 = vrot.lane.b32.xlu1 %v720_v7, %s1370_s17  ;;  %809 = vrot.lane.b32.xlu0 %v718_v10, %s1368_s15 }
 0x25f   : > { %811 = vrot.lane.b32.xlu1 %v720_v7, %s1368_s15  ;;  %793 = vrot.lane.b32.xlu0 %v718_v10, %s1369_s16 }
 0x263   : > { %795 = vrot.lane.b32.xlu1 %v720_v7, %s1369_s16  ;;  %837 = vrot.lane.b32.xlu0 %v717_v57, %s1371_s18  ;;  %s1928_s16 = scalar_lea.vmem %s1950_s9, %s1326_s28 }
 0x267   : > { %839 = vrot.lane.b32.xlu1 %v719_v11, %s1371_s18  ;;  %773 = vrot.lane.b32.xlu0 %v718_v10, %s1373_s20 }
 0x26b   : > { %775 = vrot.lane.b32.xlu1 %v720_v7, %s1373_s20  ;;  %757 = vrot.lane.b32.xlu0 %v718_v10, %s1372_s19 }
 0x26f   : > { %759 = vrot.lane.b32.xlu1 %v720_v7, %s1372_s19  ;;  %741 = vrot.lane.b32.xlu0 %v718_v10, %s1374_s21 }
 0x273   : > { %743 = vrot.lane.b32.xlu1 %v720_v7, %s1374_s21  ;;  %725 = vrot.lane.b32.xlu0 %v718_v10, %s1376_s22 }
 0x277   : > { %727 = vrot.lane.b32.xlu1 %v720_v7, %s1376_s22  ;;  %841 = vrot.lane.b32.xlu0 %v718_v10, %s1371_s18 }
 0x27b   : > { %843 = vrot.lane.b32.xlu1 %v720_v7, %s1371_s18  ;;  %873 = vperm.xlu0 %1347, %v358_v45  }
 0x27f   : > { %878 = vperm.xlu1 %1348, %v359_v24   ;;  %955 = vperm.xlu0 %1347, %v362_v26  }
 0x283   : > { %960 = vperm.xlu1 %1348, %v363_v25   ;;  %945 = vperm.xlu0 %1347, %v360_v27  }
 0x287   : > { %950 = vperm.xlu1 %1348, %v361_v28   ;;  %1204 = vperm.xlu0 %1347, %v364_v29  }
 0x28b   : > { %1209 = vperm.xlu1 %1348, %v365_v39   ;;  %1214 = vperm.xlu0 %1347, %v366_v38  }
 0x28f   : > { %1219 = vperm.xlu1 %1348, %v367_v48  }
 0x2ad   : > { %v822_v49 = vpop.permute.xlu0 %821 }
 0x2b1   : > { %v824_v31 = vpop.permute.xlu1 %823  ;;  %v806_v32 = vpop.permute.xlu0 %805 }
 0x2b5   : > { %v808_v33 = vpop.permute.xlu1 %807  ;;  %v790_v34 = vpop.permute.xlu0 %789 }
 0x2b9   : > { %v792_v35 = vpop.permute.xlu1 %791  ;;  %v770_v40 = vpop.permute.xlu0 %769 }
 0x2bd   : > { %v772_v41 = vpop.permute.xlu1 %771  ;;  %v1752_v46 = vpop.permute.xlu0 %753 }
 0x2c1   : > { %v1754_v47 = vpop.permute.xlu1 %755  ;;  %v1756_v50 = vpop.permute.xlu0 %737 }
 0x2c5   : > { %v1758_v5 = vpop.permute.xlu1 %739  ;;  %v1760_v51 = vpop.permute.xlu0 %721 }
 0x2c9   : > { %v1762_v52 = vpop.permute.xlu1 %723  ;;  %v826_v53 = vpop.permute.xlu0 %825 }
 0x2ca   : > { %v829_v56 = vsel %vm493_vm1, %v822_v49, %v826_v53  ;;  %v831_v57 = vsel %vm493_vm1, %v826_v53, %v822_v49 }
 0x2cb   : > { %v833_v62 = vmul.f32 %v829_v56, %v1518_v20  ;;  %v834_v10 = vmul.f32 %v831_v57, %v1521_v21 }
 0x2cd   : > { %v828_v58 = vpop.permute.xlu1 %827  ;;  %v810_v59 = vpop.permute.xlu0 %809 }
 0x2ce   : > { %v830_v60 = vsel %vm493_vm1, %v824_v31, %v828_v58  ;;  %v832_v61 = vsel %vm493_vm1, %v828_v58, %v824_v31  ;;  %v813_v7 = vsel %vm476_vm0, %v806_v32, %v810_v59  ;;  %v815_v44 = vsel %vm476_vm0, %v810_v59, %v806_v32 }
 0x2cf   : > { %v835_v11 = vmul.f32 %v830_v60, %v1518_v20  ;;  %v836_v63 = vmul.f32 %v832_v61, %v1521_v21  ;;  %v817_v20 = vmul.f32 %v813_v7, %v1506_v14  ;;  %v818_v21 = vmul.f32 %v815_v44, %v1509_v15 }
 0x2d0   : > { %vm1134_vm1 = vcmask 23552  }
 0x2d1   : > { %v867_v45 = vpack.c.bf16 %v835_v11, %v833_v62  ;;  %v812_v24 = vpop.permute.xlu1 %811  ;;  %v794_v26 = vpop.permute.xlu0 %793  ;;  %v868_v25 = vpack.c.bf16 %v836_v63, %v834_v10 }
 0x2d2   : > { %v814_v27 = vsel %vm476_vm0, %v808_v33, %v812_v24  ;;  %v816_v28 = vsel %vm476_vm0, %v812_v24, %v808_v33  ;;  %v797_v38 = vsel %vm459_vm2, %v790_v34, %v794_v26  ;;  %v799_v48 = vsel %vm459_vm2, %v794_v26, %v790_v34 }
 0x2d3   : > { %v819_v29 = vmul.f32 %v814_v27, %v1506_v14  ;;  %v820_v39 = vmul.f32 %v816_v28, %v1509_v15  ;;  %894 = vmatprep.subr.bf16.mxu1 %v868_v25  ;;  %v801_v15 = vmul.f32 %v797_v38, %v1524_v22  ;;  %v802_v56 = vmul.f32 %v799_v48, %v1527_v23 }
 0x2d4   : > { %895 = vmatpush1.bf16.msra.mxu1 %v867_v45  ;;  %vm1056_vm0 = vcmask 236544  }
 0x2d5   : > { %v865_v49 = vpack.c.bf16 %v819_v29, %v817_v20  ;;  %v796_v31 = vpop.permute.xlu1 %795  ;;  %v1792_v32 = vpop.permute.xlu0 %837  ;;  %v866_v33 = vpack.c.bf16 %v820_v39, %v818_v21 }
 0x2d6   : > { %v798_v53 = vsel %vm459_vm2, %v792_v35, %v796_v31  ;;  %v800_v14 = vsel %vm459_vm2, %v796_v31, %v792_v35 }
 0x2d7   : > { %v803_v57 = vmul.f32 %v798_v53, %v1524_v22  ;;  %v804_v34 = vmul.f32 %v800_v14, %v1527_v23  ;;  %896 = vmatprep.subr.bf16.mxu1 %v866_v33 }
 0x2d8   : > { %897 = vmatpush1.bf16.msra.mxu1 %v865_v49 }
 0x2d9   : > { %v863_v58 = vpack.c.bf16 %v803_v57, %v801_v15  ;;  %v1802_v59 = vpop.permute.xlu1 %839  ;;  %v774_v60 = vpop.permute.xlu0 %773  ;;  %v864_v61 = vpack.c.bf16 %v804_v34, %v802_v56 }
 0x2da   : > { %v777_v62 = vsel %vm429_vm8, %v770_v40, %v774_v60  ;;  %v779_v35 = vsel %vm429_vm8, %v774_v60, %v770_v40 }
 0x2db   : > { %898 = vmatprep.subr.bf16.mxu1 %v864_v61  ;;  %v781_v63 = vmul.f32 %v779_v35, %v1601_v16  ;;  %v782_v7 = vmul.f32 %v777_v62, %v1604_v18 }
 0x2dc   : > { %899 = vmatpush1.bf16.msra.mxu1 %v863_v58 }
 0x2dd   : > { %v776_v10 = vpop.permute.xlu1 %775  ;;  %900 = vmatprep.subr.bf16.mxu1 %v862_v19  ;;  %v758_v22 = vpop.permute.xlu0 %757 }
 0x2de   : > { %v778_v23 = vsel %vm429_vm8, %v772_v41, %v776_v10  ;;  %v780_v11 = vsel %vm429_vm8, %v776_v10, %v772_v41  ;;  %v761_v12 = vsel %vm412_vm7, %v1752_v46, %v758_v22  ;;  %v763_v13 = vsel %vm412_vm7, %v758_v22, %v1752_v46  ;;  %v1353_v22 = vld [vmem:[%s1945_s4] ss:$8 sps:$4 sm:$0xff]  }
 0x2df   : > { %v783_v44 = vmul.f32 %v780_v11, %v1601_v16  ;;  %v784_v40 = vmul.f32 %v778_v23, %v1604_v18  ;;  %v765_v26 = vmul.f32 %v763_v13, %v1590_v3  ;;  %v766_v46 = vmul.f32 %v761_v12, %v1593_v4 }
 0x2e0   : > { %901 = vmatpush1.bf16.msra.mxu1 %v861_v17 }
 0x2e1   : > { %v859_v19 = vpack.c.bf16 %v783_v44, %v781_v63  ;;  %v760_v41 = vpop.permute.xlu1 %759  ;;  %v742_v45 = vpop.permute.xlu0 %741  ;;  %v860_v24 = vpack.c.bf16 %v784_v40, %v782_v7 }
 0x2e2   : > { %v762_v16 = vsel %vm412_vm7, %v1754_v47, %v760_v41  ;;  %v764_v18 = vsel %vm412_vm7, %v760_v41, %v1754_v47  ;;  %v745_v9 = vsel %vm395_vm9, %v1756_v50, %v742_v45  ;;  %v747_v17 = vsel %vm395_vm9, %v742_v45, %v1756_v50 }
 0x2e3   : > { %v767_v25 = vmul.f32 %v764_v18, %v1590_v3  ;;  %v768_v8 = vmul.f32 %v762_v16, %v1593_v4  ;;  %902 = vmatprep.subr.bf16.mxu1 %v860_v24  ;;  %v749_v21 = vmul.f32 %v747_v17, %v1619_v36  ;;  %v750_v29 = vmul.f32 %v745_v9, %v1622_v37  ;;  %v1354_v16 = vld [vmem:[%s1946_s5] sm:$0xff]   ;;  %v1355_v18 = vld [vmem:[%s1946_s5 + $0x8] sm:$0x7f]  }
 0x2e4   : > { %903 = vmatpush1.bf16.msra.mxu1 %v859_v19 }
 0x2e5   : > { %v857_v27 = vpack.c.bf16 %v767_v25, %v765_v26  ;;  %v744_v47 = vpop.permute.xlu1 %743  ;;  %v726_v28 = vpop.permute.xlu0 %725  ;;  %v858_v20 = vpack.c.bf16 %v768_v8, %v766_v46 }
 0x2e6   : > { %v746_v3 = vsel %vm395_vm9, %v1758_v5, %v744_v47  ;;  %v748_v4 = vsel %vm395_vm9, %v744_v47, %v1758_v5  ;;  %v729_v38 = vsel %vm378_vm11, %v1760_v51, %v726_v28  ;;  %v731_v48 = vsel %vm378_vm11, %v726_v28, %v1760_v51 }
 0x2e7   : > { %v751_v39 = vmul.f32 %v748_v4, %v1619_v36  ;;  %v752_v50 = vmul.f32 %v746_v3, %v1622_v37  ;;  %904 = vmatprep.subr.bf16.mxu1 %v858_v20  ;;  %v733_v53 = vmul.f32 %v731_v48, %v1630_v54  ;;  %v734_v14 = vmul.f32 %v729_v38, %v1633_v55 }
 0x2e8   : > { %905 = vmatpush1.bf16.msra.mxu1 %v857_v27  ;;  %v1063_v48 = vsel %vm565_vm5, 4294967295, %v1377_v30 }
 0x2e9   : > { %v855_v49 = vpack.c.bf16 %v751_v39, %v749_v21  ;;  %v728_v5 = vpop.permute.xlu1 %727  ;;  %v842_v31 = vpop.permute.xlu0 %841  ;;  %v856_v33 = vpack.c.bf16 %v752_v50, %v750_v29 }
 0x2ea   : > { %v730_v36 = vsel %vm378_vm11, %v1762_v52, %v728_v5  ;;  %v732_v37 = vsel %vm378_vm11, %v728_v5, %v1762_v52  ;;  %v845_v56 = vsel %vm510_vm4, %v1792_v32, %v842_v31  ;;  %v847_v57 = vsel %vm510_vm4, %v842_v31, %v1792_v32 }
 0x2eb   : > { %v735_v15 = vmul.f32 %v732_v37, %v1630_v54  ;;  %v736_v51 = vmul.f32 %v730_v36, %v1633_v55  ;;  %906 = vmatprep.subr.bf16.mxu1 %v856_v33  ;;  %v849_v55 = vmul.f32 %v1555_v42, %v845_v56  ;;  %v850_v61 = vmul.f32 %v1560_v43, %v847_v57 }
 0x2ec   : > { %907 = vmatpush1.bf16.msra.mxu1 %v855_v49  ;;  %v1141_v56 = vsel %vm568_vm10, 4294967295, %v1377_v30 }
 0x2ed   : > { %v853_v34 = vpack.c.bf16 %v735_v15, %v733_v53  ;;  %v844_v52 = vpop.permute.xlu1 %843  ;;  %v854_v58 = vpack.c.bf16 %v736_v51, %v734_v14  ;;  %v1064_v14 = vsel %vm574_vm14, %v1063_v48, 0 }
 0x2ee   : > { %v846_v60 = vsel %vm510_vm4, %v1802_v59, %v844_v52  ;;  %v848_v54 = vsel %vm510_vm4, %v844_v52, %v1802_v59 }
 0x2ef   : > { %v851_v62 = vmul.f32 %v1555_v42, %v846_v60  ;;  %v852_v32 = vmul.f32 %v1560_v43, %v848_v54  ;;  %908 = vmatprep.subr.bf16.mxu1 %v854_v58  ;;  %v1041_v58 = vpack.c.bf16 %v1450_v1, %v1450_v1 }
 0x2f0   : > { %909 = vmatpush1.bf16.msra.mxu1 %v853_v34 }
 0x2f1   : > { %v869_v35 = vpack.c.bf16 %v851_v62, %v849_v55  ;;  %v870_v10 = vpack.c.bf16 %v852_v32, %v850_v61  ;;  %v1142_v55 = vsel %vm577_vm6, %v1141_v56, 0  ;;  %v1040_v32 = vpack.c.bf16 %v1442_v0, %v1442_v0  ;;  %v1358_v0 = vld [vmem:[%s1947_s6] sm:$0xff]  }
 0x2f3   : > { %924 = vmatprep.subr.bf16.mxu1 %v870_v10  ;;  %v1356_v10 = vld [vmem:[%s1948_s7] sm:$0xff]   ;;  %v1144_v1 = vand.u32 %v1142_v55, %v1040_v32 }
 0x2f4   : > { %925 = vmatpush2.bf16.msra.mxu1 %v869_v35  ;;  %v1147_v35 = vand.u32 %v1142_v55, %v1041_v58 }
 0x2f6   : > { %v874_v23 = vpop.permute.xlu0 %873 }
 0x2f7   : > { %927 = vmatmul.mubr.bf16.vlgmr.msra.gmra.mxu1 %v1353_v22  ;;  %v1357_v22 = vld [vmem:[%s1948_s7 + $0x8] sm:$0xff]  }
 0x2f8   : > { %1021 = vmatprep.mubr.bf16.mxu1 %v1375_v2 }
 0x2fa   : > { %v879_v11 = vpop.permute.xlu1 %878  ;;  %v956_v8 = vpop.permute.xlu0 %955 }
 0x2fe   : > { %v961_v26 = vpop.permute.xlu1 %960  ;;  %v946_v49 = vpop.permute.xlu0 %945 }
 0x302   : > { %v951_v20 = vpop.permute.xlu1 %950 }
 0x3b7   : > { %v928_v6 = vpop.f32.mrf.mxu1 }
 0x3b8   : > { %v929_v7 = vadd.f32 %v928_v6, %v874_v23  ;;  %v1359_v6 = vld [vmem:[%s1947_s6 + $0x8] sm:$0xff]  }
 0x3b9   : > { %v930_v59 = vpop.f32.mrf.mxu1 }
 0x3ba   : > { %v931_v63 = vadd.f32 %v930_v59, %v874_v23  ;;  %v937_v41 = vmax.f32 %v929_v7, 0.0 }
 0x3bb   : > { %v932_v42 = vpop.f32.mrf.mxu1 }
 0x3bc   : > { %v933_v43 = vadd.f32 %v932_v42, %v879_v11  ;;  %v938_v13 = vmax.f32 %v931_v63, 0.0 }
 0x3bd   : > { %v934_v44 = vpop.f32.mrf.mxu1 }
 0x3be   : > { %v935_v40 = vadd.f32 %v934_v44, %v879_v11  ;;  %v939_v12 = vmax.f32 %v933_v43, 0.0 }
 0x3c0   : > { %v940_v19 = vmax.f32 %v935_v40, 0.0  ;;  %v941_v24 = vpack.c.bf16 %v939_v12, %v937_v41 }
 0x3c2   : > { %v942_v45 = vpack.c.bf16 %v940_v19, %v938_v13  ;;  %v1205_v13 = vpop.permute.xlu0 %1204 }
 0x3c4   : > { %993 = vmatprep.subr.bf16.mxu0 %v942_v45  ;;  %1327 = vmatprep.subr.bf16.mxu1 %v942_v45 }
 0x3c5   : > { %994 = vmatpush1.bf16.msra.mxu0 %v941_v24  ;;  %1328 = vmatpush1.bf16.msra.mxu1 %v941_v24 }
 0x3c8   : > { %1313 = vmatmul.mubr.msk.bf16.vlgmr.msra.gmra.mxu0 %vm890_vm12, %v1354_v16  ;;  %1314 = vmatmul.mubr.msk.bf16.vlgmr.msra.gmra.mxu1 %vm890_vm12, %v1355_v18  ;;  %v1210_v18 = vpop.permute.xlu1 %1209 }
 0x3c9   : > { %1103 = vmatprep.mubr.bf16.mxu0 %v1375_v2 }
 0x488   : > { %v1013_v46 = vpop.f32.mrf.mxu0  ;;  %v1023_v25 = vpop.f32.mrf.mxu1 }
 0x489   : > { %v1024_v27 = vadd.f32 %v1023_v25, %v956_v8  ;;  %v1014_v57 = vadd.f32 %v1013_v46, %v946_v49 }
 0x48a   : > { %v1015_v9 = vpop.f32.mrf.mxu0  ;;  %v1025_v17 = vpop.f32.mrf.mxu1 }
 0x48b   : > { %v1026_v3 = vadd.f32 %v1025_v17, %v956_v8  ;;  %v1036_v5 = vmax.f32 %v1024_v27, 0.0  ;;  %v1016_v31 = vadd.f32 %v1015_v9, %v946_v49  ;;  %v1032_v62 = vmax.f32 %v1014_v57, 0.0  ;;  %v1215_v27 = vpop.permute.xlu0 %1214 }
 0x48c   : > { %v1017_v47 = vpop.f32.mrf.mxu0  ;;  %v1027_v28 = vpop.f32.mrf.mxu1 }
 0x48d   : > { %v1028_v4 = vadd.f32 %v1027_v28, %v961_v26  ;;  %v1037_v33 = vmax.f32 %v1026_v3, 0.0  ;;  %v1018_v37 = vadd.f32 %v1017_v47, %v951_v20  ;;  %v1033_v34 = vmax.f32 %v1016_v31, 0.0 }
 0x48e   : > { %v1019_v21 = vpop.f32.mrf.mxu0  ;;  %v1029_v29 = vpop.f32.mrf.mxu1 }
 0x48f   : > { %v1038_v39 = vmax.f32 %v1028_v4, 0.0  ;;  %v1020_v50 = vadd.f32 %v1019_v21, %v951_v20  ;;  %v1030_v38 = vadd.f32 %v1029_v29, %v961_v26  ;;  %v1034_v60 = vmax.f32 %v1018_v37, 0.0  ;;  %v1220_v29 = vpop.permute.xlu1 %1219 }
 0x491   : > { %v1039_v36 = vmax.f32 %v1030_v38, 0.0  ;;  %v1044_v53 = vpack.c.bf16 %v1038_v39, %v1036_v5  ;;  %v1035_v15 = vmax.f32 %v1020_v50, 0.0  ;;  %v1042_v30 = vpack.c.bf16 %v1034_v60, %v1032_v62 }
 0x493   : > { %v1045_v51 = vpack.c.bf16 %v1039_v36, %v1037_v33  ;;  %v1066_v54 = vand.u32 %v1064_v14, %v1044_v53  ;;  %v1043_v61 = vpack.c.bf16 %v1035_v15, %v1033_v34 }
 0x495   : > { %v1069_v52 = vand.u32 %v1064_v14, %v1045_v51 }
 0x497   : > { %1083 = vmatprep.subr.bf16.mxu0 %v1069_v52 }
 0x498   : > { %1084 = vmatpush1.bf16.msra.mxu0 %v1066_v54 }
 0x499   : > { %1085 = vmatprep.subr.bf16.mxu0 %v1043_v61 }
 0x49c   : > { %1086 = vmatpush1.bf16.msra.mxu0 %v1042_v30 }
 0x49d   : > { %1163 = vmatprep.subr.bf16.mxu0 %v1147_v35 }
 0x49f   : > { %1317 = vmatmul.mubr.msk.bf16.vlgmr.msra.gmra.mxu0 %vm1056_vm0, %v1356_v10 }
 0x4a0   : > { %1164 = vmatpush1.bf16.msra.mxu0 %v1144_v1  ;;  %1113 = vmatprep.mubr.bf16.mxu0 %v1375_v2 }
 0x4a7   : > { %1318 = vmatmul.mubr.msk.bf16.gmra.mxu0 %vm1056_vm0, %v1357_v22 }
 0x4a8   : > { %1181 = vmatprep.mubr.bf16.mxu0 %v1375_v2 }
 0x4af   : > { %1321 = vmatmul.mubr.msk.bf16.vlgmr.msra.gmra.mxu0 %vm1134_vm1, %v1358_v0 }
 0x4b0   : > { %1191 = vmatprep.mubr.bf16.mxu0 %v1375_v2 }
 0x4b7   : > { %1322 = vmatmul.mubr.msk.bf16.gmra.mxu0 %vm1134_vm1, %v1359_v6 }
 0x55f   : > { %v1105_v59 = vpop.f32.mrf.mxu0 }
 0x561   : > { %v1107_v23 = vpop.f32.mrf.mxu0 }
 0x563   : > { %v1109_v11 = vpop.f32.mrf.mxu0 }
 0x565   : > { %v1111_v42 = vpop.f32.mrf.mxu0 }
 0x567   : > { %v1115_v63 = vpop.f32.mrf.mxu0 }
 0x569   : > { %v1117_v43 = vpop.f32.mrf.mxu0 }
 0x56b   : > { %v1119_v7 = vpop.f32.mrf.mxu0 }
 0x56d   : > { %v1121_v44 = vpop.f32.mrf.mxu0 }
 0x56f   : > { %v1183_v40 = vpop.f32.mrf.mxu0 }
 0x570   : > { %v1184_v12 = vadd.f32 %v1183_v40, %v1105_v59 }
 0x571   : > { %v1185_v2 = vpop.f32.mrf.mxu0 }
 0x572   : > { %v1222_v19 = vadd.f32 %v1205_v13, %v1184_v12  ;;  %v1186_v41 = vadd.f32 %v1185_v2, %v1107_v23 }
 0x573   : > { %v1187_v45 = vpop.f32.mrf.mxu0 }
 0x574   : > { %1230 = vst [vmem:[%s1928_s16] sm:$0xff] %v1222_v19  ;;  %v1223_v24 = vadd.f32 %v1205_v13, %v1186_v41  ;;  %v1188_v16 = vadd.f32 %v1187_v45, %v1109_v11 }
 0x575   : > { %v1189_v26 = vpop.f32.mrf.mxu0 }
 0x576   : > { %1231 = vst [vmem:[%s1928_s16 + $0x8] sm:$0xff] %v1223_v24  ;;  %v1224_v46 = vadd.f32 %v1210_v18, %v1188_v16  ;;  %v1190_v25 = vadd.f32 %v1189_v26, %v1111_v42 }
 0x577   : > { %v1193_v8 = vpop.f32.mrf.mxu0 }
 0x578   : > { %1232 = vst [vmem:[%s1928_s16 + $0x10] sm:$0xff] %v1224_v46  ;;  %v1225_v9 = vadd.f32 %v1210_v18, %v1190_v25  ;;  %v1194_v17 = vadd.f32 %v1193_v8, %v1115_v63 }
 0x579   : > { %v1195_v47 = vpop.f32.mrf.mxu0 }
 0x57a   : > { %1233 = vst [vmem:[%s1928_s16 + $0x18] sm:$0xff] %v1225_v9  ;;  %v1226_v28 = vadd.f32 %v1215_v27, %v1194_v17  ;;  %v1196_v20 = vadd.f32 %v1195_v47, %v1117_v43 }
 0x57b   : > { %v1197_v3 = vpop.f32.mrf.mxu0 }
 0x57c   : > { %1234 = vst [vmem:[%s1928_s16 + $0x20] sm:$0xff] %v1226_v28  ;;  %v1227_v4 = vadd.f32 %v1215_v27, %v1196_v20  ;;  %v1198_v21 = vadd.f32 %v1197_v3, %v1119_v7 }
 0x57d   : > { %v1199_v39 = vpop.f32.mrf.mxu0 }
 0x57e   : > { %1235 = vst [vmem:[%s1928_s16 + $0x28] sm:$0xff] %v1227_v4  ;;  %v1228_v50 = vadd.f32 %v1220_v29, %v1198_v21  ;;  %v1200_v38 = vadd.f32 %v1199_v39, %v1121_v44 }
 0x580   : > { %1236 = vst [vmem:[%s1928_s16 + $0x30] sm:$0xff] %v1228_v50  ;;  %v1229_v48 = vadd.f32 %v1220_v29, %v1200_v38 }
 0x582   : > { %1237 = vst [vmem:[%s1928_s16 + $0x38] sm:$0xff] %v1229_v48 }
 0x583 PF: > { %s19_s30 = sadd.s32 1, %s1366_s30  }
 0x584   : > { %p16_p4 = scmp.ge.s32.totalorder %s19_s30, 4  }
 0x586   :  { %18 = sbr.rel (!%p16_p4) target bundleno = 1 (0x1), region = 86 }

</bundles_post_ra>
